<compile_context>
chip_gen: v6e
topology: v6e:2x2x1
jax: 0.10.0
libtpu: 0.0.40
codegen_flags: <defaults>
</compile_context>

<pallas_src>
import functools

import jax
import jax.numpy as jnp
from jax.experimental import pallas as pl
from jax.experimental.pallas import tpu as pltpu


LANE = 128            # each layer's OUTPUT dim is padded to this
MAX_TILE_B = 1024     # max batch rows per grid step
MIN_TILE_B = 256      # min batch rows per grid step / tile granularity


def _round_up(x: int, m: int) -> int:
    return ((x + m - 1) // m) * m


def _choose_tile_b(batch: int) -> int:
    """Adaptive batch tile: 256..1024 rows; >= 2 grid steps whenever there is
    enough work to split across the two v7x TensorCores."""
    b_req = _round_up(batch, MIN_TILE_B)
    if b_req <= MIN_TILE_B:
        return MIN_TILE_B
    n_tiles = max(2, -(-b_req // MAX_TILE_B))
    return _round_up(-(-b_req // n_tiles), MIN_TILE_B)


def _mlp_kernel(n_layers, obs_ref, *refs):
    """Fused MLP forward for one batch tile.

    refs = (W_0, b_0, ..., W_{n-1}, b_{n-1}, w_head_row, b_head, out_ref)
      W_i        : [in_pad, out_pad]  bf16 (VMEM-resident across the grid)
      b_i        : [1, out_pad]       f32
      w_head_row : [1, L_pad]         f32 (head weight stored as a row)
      b_head     : [1, 1]             f32
      out_ref    : [tile_b, 1]        f32
    """
    out_ref = refs[-1]
    p = refs[:-1]

    tile_b = obs_ref.shape[0]
    half = tile_b // 2

    # Two independent row halves -> two dependency chains, so one half's MXU
    # matmul can overlap the other half's EUP tanh (a single chain is a strict
    # MXU -> EUP -> MXU serial dependency).
    h_a = obs_ref[:half, :]
    h_b = obs_ref[half:, :]

    for layer in range(n_layers):
        w = p[2 * layer][...]        # bf16 [in_pad, out_pad]
        b = p[2 * layer + 1][...]    # f32  [1, out_pad]
        z_a = jnp.dot(h_a.astype(jnp.bfloat16), w,
                      preferred_element_type=jnp.float32)
        z_b = jnp.dot(h_b.astype(jnp.bfloat16), w,
                      preferred_element_type=jnp.float32)
        # Bias + tanh stay in f32 (v5e VPU/EUP have no bf16).
        h_a = jnp.tanh(z_a + b)
        h_b = jnp.tanh(z_b + b)

    # out_features == 1 head: VPU broadcast-multiply + XLU lane-axis sum
    # instead of an M=1 MXU matmul (uses VPU/XLU slots idle in the epilogue).
    w_head = p[2 * n_layers][...]      # f32 [1, L_pad]
    b_head = p[2 * n_layers + 1][...]  # f32 [1, 1]
    v_a = jnp.sum(h_a * w_head, axis=-1, keepdims=True) + b_head   # [half, 1]
    v_b = jnp.sum(h_b * w_head, axis=-1, keepdims=True) + b_head
    out_ref[:half, :] = v_a.astype(out_ref.dtype)
    out_ref[half:, :] = v_b.astype(out_ref.dtype)


def prepare_params(params, ob_dim):
    """Pad / transpose / bf16-cast the parameters ONCE (not per forward call).

    params: list of (W, b); W is [in, out], b is [out] or [1, out]; the last
            pair is the output head (out == 1).
    Only OUTPUT dims are padded to 128; contraction dims keep their real size
    rounded to 16 (bf16 sublane packing).  Padded rows/cols are zero, so the
    padded lanes of every hidden activation stay exactly 0 (tanh(0) == 0).
    """
    k_pad = _round_up(ob_dim, 16)
    flat = []
    prev = k_pad
    for w, b in params[:-1]:
        fin, fout = w.shape
        fout_pad = _round_up(fout, LANE)
        w_p = jnp.pad(jnp.asarray(w, jnp.float32),
                      ((0, prev - fin), (0, fout_pad - fout))).astype(jnp.bfloat16)
        b_p = jnp.pad(jnp.asarray(b, jnp.float32).reshape(1, fout),
                      ((0, 0), (0, fout_pad - fout)))
        flat += [w_p, b_p]
        prev = fout_pad
    w_head, b_head = params[-1]
    fin = w_head.shape[0]
    w_row = jnp.pad(jnp.asarray(w_head, jnp.float32).reshape(fin, 1).T,
                    ((0, 0), (0, prev - fin)))               # f32 [1, L_pad]
    b_hh = jnp.asarray(b_head, jnp.float32).reshape(1, 1)    # f32 [1, 1]
    flat += [w_row, b_hh]
    return tuple(flat)


def value_critic_forward(obs, prepared):
    """ValueCritic forward: obs [B, ob_dim] f32 -> values [B, 1] f32."""
    B, ob_dim = obs.shape
    flat = list(prepared)
    n_layers = len(flat) // 2 - 1
    k_pad = flat[0].shape[0] if n_layers > 0 else flat[0].shape[1]

    tile_b = _choose_tile_b(B)
    b_pad = _round_up(B, tile_b)
    num_tiles = b_pad // tile_b

    # Pad only the batch dim and the (tiny, 16-aligned) first-layer K dim; the
    # obs block's last dim equals the full array dim, so no 128-padding of K.
    obs_p = jnp.pad(obs.astype(jnp.float32),
                    ((0, b_pad - B), (0, k_pad - ob_dim)))

    # obs / out tiled over the batch grid; params VMEM-resident (index (0,0)).
    in_specs = [pl.BlockSpec((tile_b, k_pad), lambda i: (i, 0))]
    for q in flat:
        in_specs.append(pl.BlockSpec(q.shape, lambda i: (0, 0)))
    out_spec = pl.BlockSpec((tile_b, 1), lambda i: (i, 0))
    out_shape = jax.ShapeDtypeStruct((b_pad, 1), jnp.float32)

    # VMEM budget from the actual footprint (obs/out tiles and params each get
    # 2 pipeline buffers) with headroom, capped at v7x's 64 MiB physical VMEM.
    param_bytes = sum(q.size * q.dtype.itemsize for q in flat)
    tile_bytes = tile_b * k_pad * 4 + tile_b * 4
    vmem_needed = 2 * tile_bytes + 2 * param_bytes
    vmem_limit = min(64 * 1024 * 1024,
                     max(8 * 1024 * 1024, 2 * vmem_needed + 4 * 1024 * 1024))

    # Scheduler hint so XLA can overlap this small call with its neighbours.
    flops = sum(2 * b_pad * flat[2 * l].shape[0] * flat[2 * l].shape[1]
                for l in range(n_layers))
    flops += 2 * b_pad * flat[2 * n_layers].shape[1]          # head mul + sum
    transcendentals = b_pad * sum(flat[2 * l].shape[1] for l in range(n_layers))
    bytes_accessed = int(obs_p.size * 4 + param_bytes + b_pad * 4)
    cost = pl.CostEstimate(flops=int(flops), transcendentals=int(transcendentals),
                           bytes_accessed=bytes_accessed)

    out = pl.pallas_call(
        functools.partial(_mlp_kernel, n_layers),
        out_shape=out_shape,
        grid=(num_tiles,),
        in_specs=in_specs,
        out_specs=out_spec,
        compiler_params=pltpu.CompilerParams(
            dimension_semantics=("parallel",),   # megacore sharding on v7x
            vmem_limit_bytes=int(vmem_limit),
        ),
        cost_estimate=cost,
    )(obs_p, *flat)

    return out[:B]                               # drop batch padding


def init_params(key, ob_dim, n_layers, layer_size):
    """Deterministic parameter init (mimics nn.Linear's uniform fan-in init)."""
    sizes = [ob_dim] + [layer_size] * n_layers + [1]
    params = []
    for i in range(len(sizes) - 1):
        fan_in, fan_out = sizes[i], sizes[i + 1]
        key, kw, kb = jax.random.split(key, 3)
        bound = 1.0 / jnp.sqrt(jnp.float32(fan_in))
        w = jax.random.uniform(kw, (fan_in, fan_out), jnp.float32,
                               minval=-bound, maxval=bound)
        b = jax.random.uniform(kb, (1, fan_out), jnp.float32,
                               minval=-bound, maxval=bound)
        params.append((w, b))
    return params


def reference_forward_f32(obs, params):
    """Pure-f32 plain-JAX reference (original module semantics)."""
    h = obs
    for w, b in params[:-1]:
        h = jnp.tanh(h @ w + jnp.reshape(b, (1, -1)))
    w, b = params[-1]
    return h @ w + jnp.reshape(b, (1, -1))


def reference_forward_matched(obs, params):
    """Plain-JAX reference with the same precision policy as the kernel
    (bf16 matmul inputs, f32 accumulation and elementwise math)."""
    h = obs.astype(jnp.float32)
    for w, b in params[:-1]:
        z = jnp.dot(h.astype(jnp.bfloat16),
                    jnp.asarray(w, jnp.float32).astype(jnp.bfloat16),
                    preferred_element_type=jnp.float32)
        h = jnp.tanh(z + jnp.reshape(jnp.asarray(b, jnp.float32), (1, -1)))
    w, b = params[-1]
    return jnp.dot(h, jnp.asarray(w, jnp.float32)) + jnp.reshape(
        jnp.asarray(b, jnp.float32), (1, -1))


if __name__ == "__main__":
    ob_dim, n_layers, layer_size = 16, 2, 32

    key = jax.random.PRNGKey(0)
    key, k_obs1, k_obs2 = jax.random.split(key, 3)
    params = init_params(key, ob_dim, n_layers, layer_size)
    prepared = prepare_params(params, ob_dim)        # pad / cast ONCE

    fwd = jax.jit(value_critic_forward)

    # Case 1: tiny batch -> single 256-row tile (batch-padding path).
    obs_small = jax.random.normal(k_obs1, (8, ob_dim), jnp.float32)
    out_small = jax.block_until_ready(fwd(obs_small, prepared))
    assert out_small.shape == (8, 1), out_small.shape
    assert jnp.allclose(out_small, reference_forward_matched(obs_small, params),
                        atol=2e-3, rtol=2e-3)
    assert jnp.allclose(out_small, reference_forward_f32(obs_small, params),
                        atol=3e-2, rtol=3e-2)

    # Case 2: batch not a tile multiple -> 2 x 256-row tiles
    # (>=2 "parallel" grid steps for v7x megacore + tail slicing).
    obs_big = jax.random.normal(k_obs2, (260, ob_dim), jnp.float32)
    out_big = jax.block_until_ready(fwd(obs_big, prepared))
    assert out_big.shape == (260, 1), out_big.shape
    assert jnp.allclose(out_big, reference_forward_matched(obs_big, params),
                        atol=2e-3, rtol=2e-3)
    assert jnp.allclose(out_big, reference_forward_f32(obs_big, params),
                        atol=3e-2, rtol=3e-2)

    print("KERNEL_OK")
</pallas_src>

<mosaic_0001>
module attributes {stable_mosaic.version = 11 : i64} {
  func.func @_mlp_kernel(%arg0: i32, %arg1: memref<256x16xf32, #tpu.memory_space<vmem>>, %arg2: memref<16x128xbf16, #tpu.memory_space<vmem>>, %arg3: memref<1x128xf32, #tpu.memory_space<vmem>>, %arg4: memref<128x128xbf16, #tpu.memory_space<vmem>>, %arg5: memref<1x128xf32, #tpu.memory_space<vmem>>, %arg6: memref<1x128xf32, #tpu.memory_space<vmem>>, %arg7: memref<1x1xf32, #tpu.memory_space<vmem>>, %arg8: memref<256x1xf32, #tpu.memory_space<vmem>>) attributes {dimension_semantics = [#tpu.dimension_semantics<parallel>], iteration_bounds = array<i64: 1>, scalar_prefetch = 0 : i64, scratch_operands = 0 : i64, tpu.core_type = #tpu.core_type<tc>, window_params = [{transform_indices = @transform_0, window_bounds = array<i64: 256, 16>}, {pipeline_mode = #tpu.pipeline_mode<synchronous>, transform_indices = @transform_1, window_bounds = array<i64: 16, 128>}, {pipeline_mode = #tpu.pipeline_mode<synchronous>, transform_indices = @transform_2, window_bounds = array<i64: 1, 128>}, {pipeline_mode = #tpu.pipeline_mode<synchronous>, transform_indices = @transform_3, window_bounds = array<i64: 128, 128>}, {pipeline_mode = #tpu.pipeline_mode<synchronous>, transform_indices = @transform_4, window_bounds = array<i64: 1, 128>}, {pipeline_mode = #tpu.pipeline_mode<synchronous>, transform_indices = @transform_5, window_bounds = array<i64: 1, 128>}, {pipeline_mode = #tpu.pipeline_mode<synchronous>, transform_indices = @transform_6, window_bounds = array<i64: 1, 1>}, {transform_indices = @transform_7, window_bounds = array<i64: 256, 1>}]} {
    %c0 = arith.constant 0 : index
    %c0_0 = arith.constant 0 : index
    %0 = vector.load %arg1[%c0, %c0_0] : memref<256x16xf32, #tpu.memory_space<vmem>>, vector<128x16xf32>
    %c128 = arith.constant 128 : index
    %c0_1 = arith.constant 0 : index
    %1 = vector.load %arg1[%c128, %c0_1] : memref<256x16xf32, #tpu.memory_space<vmem>>, vector<128x16xf32>
    %c0_2 = arith.constant 0 : index
    %c0_3 = arith.constant 0 : index
    %2 = vector.load %arg2[%c0_2, %c0_3] : memref<16x128xbf16, #tpu.memory_space<vmem>>, vector<16x128xbf16>
    %c0_4 = arith.constant 0 : index
    %c0_5 = arith.constant 0 : index
    %3 = vector.load %arg3[%c0_4, %c0_5] : memref<1x128xf32, #tpu.memory_space<vmem>>, vector<1x128xf32>
    %4 = arith.truncf %0 : vector<128x16xf32> to vector<128x16xbf16>
    %cst = arith.constant dense<0.000000e+00> : vector<128x128xf32>
    %5 = tpu.matmul %4, %2, %cst {dimension_numbers = #tpu.dot_dimension_numbers<[1], [0], [0], [1], [0, 0, 1, 1], [], []>} : vector<128x16xbf16>, vector<16x128xbf16>, vector<128x128xf32> -> vector<128x128xf32>
    %6 = arith.truncf %1 : vector<128x16xf32> to vector<128x16xbf16>
    %cst_6 = arith.constant dense<0.000000e+00> : vector<128x128xf32>
    %7 = tpu.matmul %6, %2, %cst_6 {dimension_numbers = #tpu.dot_dimension_numbers<[1], [0], [0], [1], [0, 0, 1, 1], [], []>} : vector<128x16xbf16>, vector<16x128xbf16>, vector<128x128xf32> -> vector<128x128xf32>
    %8 = vector.broadcast %3 : vector<1x128xf32> to vector<128x128xf32>
    %9 = arith.addf %5, %8 : vector<128x128xf32>
    %10 = math.tanh %9 : vector<128x128xf32>
    %11 = vector.broadcast %3 : vector<1x128xf32> to vector<128x128xf32>
    %12 = arith.addf %7, %11 : vector<128x128xf32>
    %13 = math.tanh %12 : vector<128x128xf32>
    %c0_7 = arith.constant 0 : index
    %c0_8 = arith.constant 0 : index
    %14 = vector.load %arg4[%c0_7, %c0_8] : memref<128x128xbf16, #tpu.memory_space<vmem>>, vector<128x128xbf16>
    %c0_9 = arith.constant 0 : index
    %c0_10 = arith.constant 0 : index
    %15 = vector.load %arg5[%c0_9, %c0_10] : memref<1x128xf32, #tpu.memory_space<vmem>>, vector<1x128xf32>
    %16 = arith.truncf %10 : vector<128x128xf32> to vector<128x128xbf16>
    %cst_11 = arith.constant dense<0.000000e+00> : vector<128x128xf32>
    %17 = tpu.matmul %16, %14, %cst_11 {dimension_numbers = #tpu.dot_dimension_numbers<[1], [0], [0], [1], [0, 0, 1, 1], [], []>} : vector<128x128xbf16>, vector<128x128xbf16>, vector<128x128xf32> -> vector<128x128xf32>
    %18 = arith.truncf %13 : vector<128x128xf32> to vector<128x128xbf16>
    %cst_12 = arith.constant dense<0.000000e+00> : vector<128x128xf32>
    %19 = tpu.matmul %18, %14, %cst_12 {dimension_numbers = #tpu.dot_dimension_numbers<[1], [0], [0], [1], [0, 0, 1, 1], [], []>} : vector<128x128xbf16>, vector<128x128xbf16>, vector<128x128xf32> -> vector<128x128xf32>
    %20 = vector.broadcast %15 : vector<1x128xf32> to vector<128x128xf32>
    %21 = arith.addf %17, %20 : vector<128x128xf32>
    %22 = math.tanh %21 : vector<128x128xf32>
    %23 = vector.broadcast %15 : vector<1x128xf32> to vector<128x128xf32>
    %24 = arith.addf %19, %23 : vector<128x128xf32>
    %25 = math.tanh %24 : vector<128x128xf32>
    %c0_13 = arith.constant 0 : index
    %c0_14 = arith.constant 0 : index
    %26 = vector.load %arg6[%c0_13, %c0_14] : memref<1x128xf32, #tpu.memory_space<vmem>>, vector<1x128xf32>
    %c0_15 = arith.constant 0 : index
    %c0_16 = arith.constant 0 : index
    %27 = vector.load %arg7[%c0_15, %c0_16] : memref<1x1xf32, #tpu.memory_space<vmem>>, vector<1x1xf32>
    %28 = vector.broadcast %26 : vector<1x128xf32> to vector<128x128xf32>
    %29 = arith.mulf %22, %28 : vector<128x128xf32>
    %cst_17 = arith.constant dense<0.000000e+00> : vector<128xf32>
    %30 = vector.multi_reduction <add>, %29, %cst_17 [1] : vector<128x128xf32> to vector<128xf32>
    %31 = vector.shape_cast %30 : vector<128xf32> to vector<128x1xf32>
    %32 = vector.broadcast %27 : vector<1x1xf32> to vector<128x1xf32>
    %33 = arith.addf %31, %32 : vector<128x1xf32>
    %34 = vector.broadcast %26 : vector<1x128xf32> to vector<128x128xf32>
    %35 = arith.mulf %25, %34 : vector<128x128xf32>
    %cst_18 = arith.constant dense<0.000000e+00> : vector<128xf32>
    %36 = vector.multi_reduction <add>, %35, %cst_18 [1] : vector<128x128xf32> to vector<128xf32>
    %37 = vector.shape_cast %36 : vector<128xf32> to vector<128x1xf32>
    %38 = vector.broadcast %27 : vector<1x1xf32> to vector<128x1xf32>
    %39 = arith.addf %37, %38 : vector<128x1xf32>
    %c0_19 = arith.constant 0 : index
    %c0_20 = arith.constant 0 : index
    %40 = vector.load %arg8[%c0_19, %c0_20] : memref<256x1xf32, #tpu.memory_space<vmem>>, vector<128x1xf32>
    tpu.vector_store %arg8[%c0_19, %c0_20], %33 {strides = array<i32>} : memref<256x1xf32, #tpu.memory_space<vmem>>, vector<128x1xf32>,
    %c128_21 = arith.constant 128 : index
    %c0_22 = arith.constant 0 : index
    %41 = vector.load %arg8[%c128_21, %c0_22] : memref<256x1xf32, #tpu.memory_space<vmem>>, vector<128x1xf32>
    tpu.vector_store %arg8[%c128_21, %c0_22], %39 {strides = array<i32>} : memref<256x1xf32, #tpu.memory_space<vmem>>, vector<128x1xf32>,
    return
  }
  func.func @transform_0(%arg0: i32) -> (i32, i32) {
    %c0_i32 = arith.constant 0 : i32
    %c0_i32_0 = arith.constant 0 : i32
    return %arg0, %c0_i32 : i32, i32
  }
  func.func @transform_1(%arg0: i32) -> (i32, i32) {
    %c0_i32 = arith.constant 0 : i32
    %c0_i32_0 = arith.constant 0 : i32
    %c0_i32_1 = arith.constant 0 : i32
    return %c0_i32, %c0_i32_0 : i32, i32
  }
  func.func @transform_2(%arg0: i32) -> (i32, i32) {
    %c0_i32 = arith.constant 0 : i32
    %c0_i32_0 = arith.constant 0 : i32
    %c0_i32_1 = arith.constant 0 : i32
    return %c0_i32, %c0_i32_0 : i32, i32
  }
  func.func @transform_3(%arg0: i32) -> (i32, i32) {
    %c0_i32 = arith.constant 0 : i32
    %c0_i32_0 = arith.constant 0 : i32
    %c0_i32_1 = arith.constant 0 : i32
    return %c0_i32, %c0_i32_0 : i32, i32
  }
  func.func @transform_4(%arg0: i32) -> (i32, i32) {
    %c0_i32 = arith.constant 0 : i32
    %c0_i32_0 = arith.constant 0 : i32
    %c0_i32_1 = arith.constant 0 : i32
    return %c0_i32, %c0_i32_0 : i32, i32
  }
  func.func @transform_5(%arg0: i32) -> (i32, i32) {
    %c0_i32 = arith.constant 0 : i32
    %c0_i32_0 = arith.constant 0 : i32
    %c0_i32_1 = arith.constant 0 : i32
    return %c0_i32, %c0_i32_0 : i32, i32
  }
  func.func @transform_6(%arg0: i32) -> (i32, i32) {
    %c0_i32 = arith.constant 0 : i32
    %c0_i32_0 = arith.constant 0 : i32
    %c0_i32_1 = arith.constant 0 : i32
    return %c0_i32, %c0_i32_0 : i32, i32
  }
  func.func @transform_7(%arg0: i32) -> (i32, i32) {
    %c0_i32 = arith.constant 0 : i32
    %c0_i32_0 = arith.constant 0 : i32
    return %arg0, %c0_i32 : i32, i32
  }
}

</mosaic_0001>

<bundles_post_ra>
// kernel: value_critic_forward.1
= control target key start
LH: loop header
LB: loop body
LE: loop exit
PB: predicated region body
PF: predicated region fallthrough
CT: control target
= control target key end

     0   :  { %vm92_vm0 = vcmask 130048   ;;  %vm822_vm1 = vcmask 7168   ;;  %s1630_s1 = inlined_call_operand.vmem [shape: bf16[16,128], index: 1, kind: input, shape index: {}]   ;;  %s1631_s0 = inlined_call_operand.vmem [shape: f32[256,16], index: 0, kind: input, shape index: {}]   ;;  %s1632_s3 = inlined_call_operand.vmem [shape: bf16[128,128], index: 3, kind: input, shape index: {}]   ;;  %s1633_s2 = inlined_call_operand.vmem [shape: f32[1,128], index: 2, kind: input, shape index: {}]   ;;  %s1634_s6 = inlined_call_operand.<no memory space> [shape: f32[1,1], index: 6, kind: input, shape index: {}]   ;;  %s1635_s4 = inlined_call_operand.vmem [shape: f32[1,128], index: 4, kind: input, shape index: {}]   ;;  %s1636_s5 = inlined_call_operand.vmem [shape: f32[1,128], index: 5, kind: input, shape index: {}]   ;;  %s1637_s7 = inlined_call_operand.vmem [shape: f32[256,1], index: 7, kind: output, shape index: {}]  }
   0x1   :  { %v1038_v0 = vld [vmem:[%s1630_s1] sm:$0xff]   ;;  %v30_v2 = vld [vmem:[%s1631_s0 + $0x8] sm:$0xff]  ;;  %v31_v6 = vld [vmem:[%s1631_s0 + $0x10] sm:$0xff] }
   0x2   :  { %v29_v1 = vld [vmem:[%s1631_s0] sm:$0xff]  ;;  %938 = vmatprep.subr.bf16.mxu0 %v1038_v0  ;;  %956 = vmatprep.subr.bf16.mxu1 %v1038_v0  ;;  %v46_v5 = vld [vmem:[%s1631_s0 + $0x88] sm:$0xff]  ;;  %v32_v7 = vld [vmem:[%s1631_s0 + $0x18] sm:$0xff] }
   0x3   :  { %v45_v3 = vld [vmem:[%s1631_s0 + $0x80] sm:$0xff]  ;;  %v64_v4 = vpack.c.bf16 %v30_v2, %v29_v1  ;;  %939 = vmatpush3.bf16.msra.mxu0 %v1038_v0  ;;  %957 = vmatpush3.bf16.msra.mxu1 %v1038_v0  ;;  %v65_v9 = vpack.c.bf16 %v32_v7, %v31_v6  ;;  %v47_v10 = vld [vmem:[%s1631_s0 + $0x90] sm:$0xff]  ;;  %v48_v11 = vld [vmem:[%s1631_s0 + $0x98] sm:$0xff] }
   0x4   :  { %v72_v8 = vpack.c.bf16 %v46_v5, %v45_v3  ;;  %v33_v12 = vld [vmem:[%s1631_s0 + $0x20] sm:$0xff]  ;;  %v73_v13 = vpack.c.bf16 %v48_v11, %v47_v10  ;;  %v34_v14 = vld [vmem:[%s1631_s0 + $0x28] sm:$0xff]  ;;  %v35_v19 = vld [vmem:[%s1631_s0 + $0x30] sm:$0xff] }
   0x5   :  { %940 = vmatprep.mubr.msk.bf16.mxu0 %vm92_vm0, %v64_v4  ;;  %v49_v15 = vld [vmem:[%s1631_s0 + $0xa0] sm:$0xff]  ;;  %v50_v16 = vld [vmem:[%s1631_s0 + $0xa8] sm:$0xff]  ;;  %v66_v17 = vpack.c.bf16 %v34_v14, %v33_v12  ;;  %v36_v20 = vld [vmem:[%s1631_s0 + $0x38] sm:$0xff] }
   0x6   :  { %958 = vmatprep.mubr.msk.bf16.mxu1 %vm92_vm0, %v72_v8  ;;  %v74_v18 = vpack.c.bf16 %v50_v16, %v49_v15  ;;  %941 = vmatmul.mubr.msk.bf16.vlgmr.msra.gmra.mxu0 %vm92_vm0, %v65_v9  ;;  %v51_v21 = vld [vmem:[%s1631_s0 + $0xb0] sm:$0xff]  ;;  %v52_v22 = vld [vmem:[%s1631_s0 + $0xb8] sm:$0xff]  ;;  %v37_v23 = vld [vmem:[%s1631_s0 + $0x40] sm:$0xff]  ;;  %v67_v27 = vpack.c.bf16 %v36_v20, %v35_v19 }
   0x7   :  { %959 = vmatmul.mubr.msk.bf16.vlgmr.msra.gmra.mxu1 %vm92_vm0, %v73_v13  ;;  %944 = vmatprep.mubr.msk.bf16.mxu0 %vm92_vm0, %v66_v17  ;;  %v38_v24 = vld [vmem:[%s1631_s0 + $0x48] sm:$0xff]  ;;  %v53_v25 = vld [vmem:[%s1631_s0 + $0xc0] sm:$0xff]  ;;  %v75_v28 = vpack.c.bf16 %v52_v22, %v51_v21  ;;  %v1039_v31 = vld [vmem:[%s1632_s3 + $0x38] sm:$0xff]  }
   0x8   :  { %962 = vmatprep.mubr.msk.bf16.mxu1 %vm92_vm0, %v74_v18  ;;  %v54_v26 = vld [vmem:[%s1631_s0 + $0xc8] sm:$0xff]  ;;  %v68_v29 = vpack.c.bf16 %v38_v24, %v37_v23  ;;  %v39_v32 = vld [vmem:[%s1631_s0 + $0x50] sm:$0xff]  ;;  %v40_v33 = vld [vmem:[%s1631_s0 + $0x58] sm:$0xff]  ;;  %974 = vmatprep.subr.bf16.mxu0 %v1039_v31 }
   0x9   :  { %v76_v30 = vpack.c.bf16 %v54_v26, %v53_v25  ;;  %v55_v34 = vld [vmem:[%s1631_s0 + $0xd0] sm:$0xff]  ;;  %v56_v35 = vld [vmem:[%s1631_s0 + $0xd8] sm:$0xff]  ;;  %v41_v37 = vld [vmem:[%s1631_s0 + $0x60] sm:$0xff]  ;;  %1006 = vmatprep.subr.bf16.mxu1 %v1039_v31  ;;  %975 = vmatpush3.bf16.msra.mxu0 %v1039_v31  ;;  %v69_v41 = vpack.c.bf16 %v40_v33, %v39_v32 }
   0xa   :  { %v1040_v36 = vld [vmem:[%s1632_s3 + $0x30] sm:$0xff]   ;;  %v42_v38 = vld [vmem:[%s1631_s0 + $0x68] sm:$0xff]  ;;  %v57_v39 = vld [vmem:[%s1631_s0 + $0xe0] sm:$0xff]  ;;  %1007 = vmatpush3.bf16.msra.mxu1 %v1039_v31  ;;  %v77_v42 = vpack.c.bf16 %v56_v35, %v55_v34 }
   0xb   :  { %v58_v40 = vld [vmem:[%s1631_s0 + $0xe8] sm:$0xff]  ;;  %976 = vmatprep.subr.bf16.mxu0 %v1040_v36  ;;  %1008 = vmatprep.subr.bf16.mxu1 %v1040_v36  ;;  %v70_v43 = vpack.c.bf16 %v42_v38, %v41_v37  ;;  %v43_v45 = vld [vmem:[%s1631_s0 + $0x70] sm:$0xff]  ;;  %v44_v46 = vld [vmem:[%s1631_s0 + $0x78] sm:$0xff] }
   0xc   :  { %v78_v44 = vpack.c.bf16 %v58_v40, %v57_v39  ;;  %v59_v47 = vld [vmem:[%s1631_s0 + $0xf0] sm:$0xff]  ;;  %v60_v48 = vld [vmem:[%s1631_s0 + $0xf8] sm:$0xff]  ;;  %v71_v49 = vpack.c.bf16 %v44_v46, %v43_v45  ;;  %v1041_v51 = vld [vmem:[%s1632_s3 + $0x28] sm:$0xff]  }
   0xd   :  { %977 = vmatpush3.bf16.msra.mxu0 %v1040_v36  ;;  %v79_v50 = vpack.c.bf16 %v60_v48, %v59_v47  ;;  %v1042_v52 = vld [vmem:[%s1632_s3 + $0x20] sm:$0xff]   ;;  %v1043_v53 = vld [vmem:[%s1632_s3 + $0x18] sm:$0xff]   ;;  %v1044_v54 = vld [vmem:[%s1632_s3 + $0x10] sm:$0xff]  }
   0xe   :  { %945 = vmatmul.mubr.msk.bf16.gmra.mxu0 %vm92_vm0, %v67_v27  ;;  %1009 = vmatpush3.bf16.msra.mxu1 %v1040_v36  ;;  %v1045_v55 = vld [vmem:[%s1632_s3 + $0x8] sm:$0xff]   ;;  %v1046_v56 = vld [vmem:[%s1632_s3] sm:$0xff]  }
   0xf   :  { %963 = vmatmul.mubr.msk.bf16.gmra.mxu1 %vm92_vm0, %v75_v28  ;;  %948 = vmatprep.mubr.msk.bf16.mxu0 %vm92_vm0, %v68_v29  ;;  %v1357_v57 = vld [vmem:[%s1633_s2] ss:$0 sm:$0xff] }
  0x10   :  { %966 = vmatprep.mubr.msk.bf16.mxu1 %vm92_vm0, %v76_v30  ;;  %978 = vmatprep.subr.bf16.mxu0 %v1041_v51 }
  0x11   :  { %1010 = vmatprep.subr.bf16.mxu1 %v1041_v51  ;;  %979 = vmatpush3.bf16.msra.mxu0 %v1041_v51 }
  0x12   :  { %1011 = vmatpush3.bf16.msra.mxu1 %v1041_v51  ;;  %980 = vmatprep.subr.bf16.mxu0 %v1042_v52 }
  0x13   :  { %1012 = vmatprep.subr.bf16.mxu1 %v1042_v52 }
  0x15   :  { %981 = vmatpush3.bf16.msra.mxu0 %v1042_v52 }
  0x16   :  { %949 = vmatmul.mubr.msk.bf16.gmra.mxu0 %vm92_vm0, %v69_v41  ;;  %1013 = vmatpush3.bf16.msra.mxu1 %v1042_v52 }
  0x17   :  { %967 = vmatmul.mubr.msk.bf16.gmra.mxu1 %vm92_vm0, %v77_v42  ;;  %952 = vmatprep.mubr.msk.bf16.mxu0 %vm92_vm0, %v70_v43 }
  0x18   :  { %970 = vmatprep.mubr.msk.bf16.mxu1 %vm92_vm0, %v78_v44  ;;  %982 = vmatprep.subr.bf16.mxu0 %v1043_v53 }
  0x19   :  { %1014 = vmatprep.subr.bf16.mxu1 %v1043_v53  ;;  %983 = vmatpush3.bf16.msra.mxu0 %v1043_v53 }
  0x1a   :  { %1015 = vmatpush3.bf16.msra.mxu1 %v1043_v53  ;;  %984 = vmatprep.subr.bf16.mxu0 %v1044_v54 }
  0x1b   :  { %1016 = vmatprep.subr.bf16.mxu1 %v1044_v54 }
  0x1d   :  { %985 = vmatpush3.bf16.msra.mxu0 %v1044_v54 }
  0x1e   :  { %953 = vmatmul.mubr.msk.bf16.gmra.mxu0 %vm92_vm0, %v71_v49  ;;  %1017 = vmatpush3.bf16.msra.mxu1 %v1044_v54 }
  0x1f   :  { %971 = vmatmul.mubr.msk.bf16.gmra.mxu1 %vm92_vm0, %v79_v50  ;;  %986 = vmatprep.subr.bf16.mxu0 %v1045_v55 }
  0x20   :  { %1018 = vmatprep.subr.bf16.mxu1 %v1045_v55 }
  0x21   :  { %987 = vmatpush3.bf16.msra.mxu0 %v1045_v55 }
  0x22   :  { %1019 = vmatpush3.bf16.msra.mxu1 %v1045_v55  ;;  %988 = vmatprep.subr.bf16.mxu0 %v1046_v56 }
  0x23   :  { %1020 = vmatprep.subr.bf16.mxu1 %v1046_v56 }
  0x25   :  { %989 = vmatpush3.bf16.msra.mxu0 %v1046_v56 }
  0x26   :  { %1021 = vmatpush3.bf16.msra.mxu1 %v1046_v56 }
  0xc6   :  { %v942_v58 = vpop.f32.mrf.mxu0 }
  0xc7   :  { %v960_v59 = vpop.f32.mrf.mxu1  ;;  %v160_v60 = vadd.f32 %v942_v58, %v1357_v57 }
  0xc8   :  { %v297_v61 = vadd.f32 %v960_v59, %v1357_v57  ;;  %v151_v62 = vpop.f32.mrf.mxu0 }
  0xc9   :  { %v288_v63 = vpop.f32.mrf.mxu1  ;;  %1047 = vtanh.f32 %v160_v60  ;;  %v152_v0 = vadd.f32 %v1357_v57, %v151_v62 }
  0xca   :  { %v289_v1 = vadd.f32 %v1357_v57, %v288_v63  ;;  %1049 = vtanh.f32 %v297_v61  ;;  %v943_v2 = vpop.f32.mrf.mxu0 }
  0xcb   :  { %v961_v3 = vpop.f32.mrf.mxu1  ;;  %1051 = vtanh.f32 %v152_v0  ;;  %v163_v4 = vadd.f32 %v943_v2, %v1357_v57 }
  0xcc   :  { %v300_v5 = vadd.f32 %v961_v3, %v1357_v57  ;;  %1053 = vtanh.f32 %v289_v1  ;;  %v154_v6 = vpop.f32.mrf.mxu0 }
  0xcd   :  { %v291_v7 = vpop.f32.mrf.mxu1  ;;  %1055 = vtanh.f32 %v163_v4  ;;  %v155_v8 = vadd.f32 %v1357_v57, %v154_v6 }
  0xce   :  { %v292_v9 = vadd.f32 %v1357_v57, %v291_v7  ;;  %1057 = vtanh.f32 %v300_v5  ;;  %v946_v10 = vpop.f32.mrf.mxu0 }
  0xcf   :  { %v964_v11 = vpop.f32.mrf.mxu1  ;;  %1059 = vtanh.f32 %v155_v8  ;;  %v176_v12 = vadd.f32 %v946_v10, %v1357_v57 }
  0xd0   :  { %v313_v13 = vadd.f32 %v964_v11, %v1357_v57  ;;  %1061 = vtanh.f32 %v292_v9  ;;  %v167_v14 = vpop.f32.mrf.mxu0 }
  0xd1   :  { %v304_v15 = vpop.f32.mrf.mxu1  ;;  %1063 = vtanh.f32 %v176_v12  ;;  %v168_v16 = vadd.f32 %v1357_v57, %v167_v14 }
  0xd2   :  { %v305_v17 = vadd.f32 %v1357_v57, %v304_v15  ;;  %1065 = vtanh.f32 %v313_v13  ;;  %v947_v18 = vpop.f32.mrf.mxu0 }
  0xd3   :  { %v965_v19 = vpop.f32.mrf.mxu1  ;;  %1067 = vtanh.f32 %v168_v16  ;;  %v179_v20 = vadd.f32 %v947_v18, %v1357_v57 }
  0xd4   :  { %v316_v21 = vadd.f32 %v965_v19, %v1357_v57  ;;  %1069 = vtanh.f32 %v305_v17  ;;  %v170_v22 = vpop.f32.mrf.mxu0 }
  0xd5   :  { %v307_v23 = vpop.f32.mrf.mxu1  ;;  %1071 = vtanh.f32 %v179_v20  ;;  %v171_v24 = vadd.f32 %v1357_v57, %v170_v22 }
  0xd6   :  { %v308_v25 = vadd.f32 %v1357_v57, %v307_v23  ;;  %v1048_v26 = vpop.eup %1047  ;;  %1073 = vtanh.f32 %v316_v21  ;;  %v950_v27 = vpop.f32.mrf.mxu0 }
  0xd7   :  { %v968_v28 = vpop.f32.mrf.mxu1  ;;  %v1050_v29 = vpop.eup %1049  ;;  %1075 = vtanh.f32 %v171_v24  ;;  %v192_v30 = vadd.f32 %v950_v27, %v1357_v57 }
  0xd8   :  { %v329_v31 = vadd.f32 %v968_v28, %v1357_v57  ;;  %v1052_v32 = vpop.eup %1051  ;;  %1077 = vtanh.f32 %v308_v25  ;;  %v183_v33 = vpop.f32.mrf.mxu0 }
  0xd9   :  { %v320_v34 = vpop.f32.mrf.mxu1  ;;  %v1054_v35 = vpop.eup %1053  ;;  %1079 = vtanh.f32 %v192_v30  ;;  %v184_v36 = vadd.f32 %v1357_v57, %v183_v33 }
  0xda   :  { %v321_v37 = vadd.f32 %v1357_v57, %v320_v34  ;;  %v1056_v38 = vpop.eup %1055  ;;  %1081 = vtanh.f32 %v329_v31  ;;  %v951_v39 = vpop.f32.mrf.mxu0 }
  0xdb   :  { %v969_v40 = vpop.f32.mrf.mxu1  ;;  %v1058_v41 = vpop.eup %1057  ;;  %1083 = vtanh.f32 %v184_v36  ;;  %v195_v42 = vadd.f32 %v951_v39, %v1357_v57  ;;  %v385_v53 = vpack.c.bf16 %v1056_v38, %v1048_v26 }
  0xdc   :  { %v332_v43 = vadd.f32 %v969_v40, %v1357_v57  ;;  %v1060_v44 = vpop.eup %1059  ;;  %1085 = vtanh.f32 %v321_v37  ;;  %v186_v45 = vpop.f32.mrf.mxu0  ;;  %v393_v58 = vpack.c.bf16 %v1058_v41, %v1050_v29 }
  0xdd   :  { %v323_v46 = vpop.f32.mrf.mxu1  ;;  %v1062_v47 = vpop.eup %1061  ;;  %1087 = vtanh.f32 %v195_v42  ;;  %v187_v48 = vadd.f32 %v1357_v57, %v186_v45  ;;  %v384_v50 = vpack.c.bf16 %v1060_v44, %v1052_v32  ;;  %v12_v42 = vstv %s1634_s6 }
  0xde   :  { %v324_v49 = vadd.f32 %v1357_v57, %v323_v46  ;;  %v1064_v51 = vpop.eup %1063  ;;  %1089 = vtanh.f32 %v332_v43  ;;  %v392_v52 = vpack.c.bf16 %v1062_v47, %v1054_v35  ;;  %v954_v54 = vpop.f32.mrf.mxu0  ;;  %13 = vst [vmem:[#allocation2] sm:$0x1] %v12_v42  ;;  %v1397_v43 = vld [vmem:[%s1635_s4] ss:$0 sm:$0xff] }
  0xdf   :  { %v972_v55 = vpop.f32.mrf.mxu1  ;;  %v1066_v56 = vpop.eup %1065  ;;  %1091 = vtanh.f32 %v187_v48  ;;  %990 = vmatprep.mubr.bf16.mxu0 %v384_v50  ;;  %v208_v59 = vadd.f32 %v954_v54, %v1357_v57 }
  0xe0   :  { %v345_v60 = vadd.f32 %v972_v55, %v1357_v57  ;;  %v1068_v61 = vpop.eup %1067  ;;  %1093 = vtanh.f32 %v324_v49  ;;  %1022 = vmatprep.mubr.bf16.mxu1 %v392_v52  ;;  %991 = vmatmul.mubr.bf16.vlgmr.msra.gmra.mxu0 %v385_v53  ;;  %v199_v62 = vpop.f32.mrf.mxu0 }
  0xe1   :  { %v336_v63 = vpop.f32.mrf.mxu1  ;;  %v1070_v0 = vpop.eup %1069  ;;  %1023 = vmatmul.mubr.bf16.vlgmr.msra.gmra.mxu1 %v393_v58  ;;  %1095 = vtanh.f32 %v208_v59  ;;  %v200_v1 = vadd.f32 %v1357_v57, %v199_v62 }
  0xe2   :  { %v337_v2 = vadd.f32 %v1357_v57, %v336_v63  ;;  %v1072_v3 = vpop.eup %1071  ;;  %v955_v4 = vpop.f32.mrf.mxu0  ;;  %1097 = vtanh.f32 %v345_v60 }
  0xe3   :  { %v973_v5 = vpop.f32.mrf.mxu1  ;;  %v1074_v6 = vpop.eup %1073  ;;  %1099 = vtanh.f32 %v200_v1  ;;  %v211_v7 = vadd.f32 %v955_v4, %v1357_v57  ;;  %v387_v19 = vpack.c.bf16 %v1072_v3, %v1064_v51 }
  0xe4   :  { %v348_v8 = vadd.f32 %v973_v5, %v1357_v57  ;;  %v1076_v9 = vpop.eup %1075  ;;  %v395_v10 = vpack.c.bf16 %v1074_v6, %v1066_v56  ;;  %v202_v11 = vpop.f32.mrf.mxu0  ;;  %1101 = vtanh.f32 %v337_v2  ;;  %v1412_v6 = vld [vmem:[%s1636_s5] ss:$0 sm:$0xff] }
  0xe5   :  { %v339_v12 = vpop.f32.mrf.mxu1  ;;  %v1078_v13 = vpop.eup %1077  ;;  %v386_v14 = vpack.c.bf16 %v1076_v9, %v1068_v61  ;;  %1103 = vtanh.f32 %v211_v7  ;;  %v203_v15 = vadd.f32 %v1357_v57, %v202_v11 }
  0xe6   :  { %v340_v16 = vadd.f32 %v1357_v57, %v339_v12  ;;  %v1080_v17 = vpop.eup %1079  ;;  %v394_v18 = vpack.c.bf16 %v1078_v13, %v1070_v0  ;;  %1105 = vtanh.f32 %v348_v8 }
  0xe7   :  { %v1082_v20 = vpop.eup %1081  ;;  %994 = vmatprep.mubr.bf16.mxu0 %v386_v14  ;;  %1107 = vtanh.f32 %v203_v15 }
  0xe8   :  { %v1084_v21 = vpop.eup %1083  ;;  %1026 = vmatprep.mubr.bf16.mxu1 %v394_v18  ;;  %995 = vmatmul.mubr.bf16.gmra.mxu0 %v387_v19  ;;  %1109 = vtanh.f32 %v340_v16 }
  0xe9   :  { %v1086_v22 = vpop.eup %1085  ;;  %1027 = vmatmul.mubr.bf16.gmra.mxu1 %v395_v10 }
  0xea   :  { %v1088_v23 = vpop.eup %1087 }
  0xeb   :  { %v1090_v24 = vpop.eup %1089  ;;  %v389_v26 = vpack.c.bf16 %v1088_v23, %v1080_v17 }
  0xec   :  { %v1092_v25 = vpop.eup %1091  ;;  %v397_v57 = vpack.c.bf16 %v1090_v24, %v1082_v20 }
  0xed   :  { %v1094_v27 = vpop.eup %1093  ;;  %v388_v28 = vpack.c.bf16 %v1092_v25, %v1084_v21 }
  0xee   :  { %v1096_v29 = vpop.eup %1095  ;;  %v396_v30 = vpack.c.bf16 %v1094_v27, %v1086_v22 }
  0xef   :  { %v1098_v31 = vpop.eup %1097  ;;  %998 = vmatprep.mubr.bf16.mxu0 %v388_v28 }
  0xf0   :  { %v1100_v32 = vpop.eup %1099  ;;  %999 = vmatmul.mubr.bf16.gmra.mxu0 %v389_v26  ;;  %1030 = vmatprep.mubr.bf16.mxu1 %v396_v30 }
  0xf1   :  { %v1102_v33 = vpop.eup %1101  ;;  %1031 = vmatmul.mubr.bf16.gmra.mxu1 %v397_v57 }
  0xf2   :  { %v1104_v34 = vpop.eup %1103 }
  0xf3   :  { %v1106_v35 = vpop.eup %1105  ;;  %v391_v37 = vpack.c.bf16 %v1104_v34, %v1096_v29 }
  0xf4   :  { %v1108_v36 = vpop.eup %1107  ;;  %v399_v40 = vpack.c.bf16 %v1106_v35, %v1098_v31 }
  0xf5   :  { %v1110_v38 = vpop.eup %1109  ;;  %v390_v39 = vpack.c.bf16 %v1108_v36, %v1100_v32 }
  0xf6   :  { %v398_v41 = vpack.c.bf16 %v1110_v38, %v1102_v33 }
  0xf7   :  { %1002 = vmatprep.mubr.bf16.mxu0 %v390_v39 }
  0xf8   :  { %1003 = vmatmul.mubr.bf16.gmra.mxu0 %v391_v37  ;;  %1034 = vmatprep.mubr.bf16.mxu1 %v398_v41 }
  0xf9   :  { %1035 = vmatmul.mubr.bf16.gmra.mxu1 %v399_v40 }
 0x1a0   :  { %v992_v44 = vpop.f32.mrf.mxu0 }
 0x1a1   :  { %v497_v45 = vadd.f32 %v992_v44, %v1397_v43  ;;  %v1024_v46 = vpop.f32.mrf.mxu1 }
 0x1a2   :  { %v610_v47 = vadd.f32 %v1024_v46, %v1397_v43  ;;  %v488_v48 = vpop.f32.mrf.mxu0 }
 0x1a3   :  { %1111 = vtanh.f32 %v497_v45  ;;  %v489_v49 = vadd.f32 %v1397_v43, %v488_v48  ;;  %v601_v50 = vpop.f32.mrf.mxu1 }
 0x1a4   :  { %1113 = vtanh.f32 %v610_v47  ;;  %v993_v51 = vpop.f32.mrf.mxu0  ;;  %v602_v54 = vadd.f32 %v1397_v43, %v601_v50 }
 0x1a5   :  { %v500_v52 = vadd.f32 %v993_v51, %v1397_v43  ;;  %v1025_v53 = vpop.f32.mrf.mxu1  ;;  %1115 = vtanh.f32 %v489_v49 }
 0x1a6   :  { %v613_v55 = vadd.f32 %v1025_v53, %v1397_v43  ;;  %v491_v56 = vpop.f32.mrf.mxu0 }
 0x1a7   :  { %1117 = vtanh.f32 %v500_v52  ;;  %v604_v58 = vpop.f32.mrf.mxu1  ;;  %v492_v62 = vadd.f32 %v1397_v43, %v491_v56 }
 0x1a8   :  { %v996_v59 = vpop.f32.mrf.mxu0  ;;  %1119 = vtanh.f32 %v613_v55  ;;  %v605_v60 = vadd.f32 %v1397_v43, %v604_v58 }
 0x1a9   :  { %v1028_v61 = vpop.f32.mrf.mxu1  ;;  %1121 = vtanh.f32 %v602_v54  ;;  %v513_v3 = vadd.f32 %v996_v59, %v1397_v43 }
 0x1aa   :  { %v504_v63 = vpop.f32.mrf.mxu0  ;;  %1123 = vtanh.f32 %v605_v60  ;;  %v626_v11 = vadd.f32 %v1028_v61, %v1397_v43 }
 0x1ab   :  { %v617_v0 = vpop.f32.mrf.mxu1  ;;  %1125 = vtanh.f32 %v492_v62  ;;  %v505_v19 = vadd.f32 %v1397_v43, %v504_v63 }
 0x1ac   :  { %v997_v1 = vpop.f32.mrf.mxu0  ;;  %v618_v28 = vadd.f32 %v1397_v43, %v617_v0 }
 0x1ad   :  { %v516_v2 = vadd.f32 %v997_v1, %v1397_v43  ;;  %v1029_v4 = vpop.f32.mrf.mxu1 }
 0x1ae   :  { %v507_v5 = vpop.f32.mrf.mxu0  ;;  %v629_v9 = vadd.f32 %v1029_v4, %v1397_v43 }
 0x1af   :  { %1127 = vtanh.f32 %v516_v2  ;;  %v508_v16 = vadd.f32 %v1397_v43, %v507_v5  ;;  %v620_v20 = vpop.f32.mrf.mxu1 }
 0x1b0   :  { %v1112_v7 = vpop.eup %1111  ;;  %1129 = vtanh.f32 %v513_v3  ;;  %v1000_v12 = vpop.f32.mrf.mxu0  ;;  %v621_v25 = vadd.f32 %v1397_v43, %v620_v20 }
 0x1b1   :  { %v1114_v8 = vpop.eup %1113  ;;  %v690_v10 = vmul.f32 %v1112_v7, %v1412_v6  ;;  %1131 = vtanh.f32 %v629_v9  ;;  %v1032_v24 = vpop.f32.mrf.mxu1  ;;  %v529_v35 = vadd.f32 %v1000_v12, %v1397_v43 }
 0x1b2   :  { %v760_v13 = vmul.f32 %v1114_v8, %v1412_v6  ;;  %v1116_v14 = vpop.eup %1115  ;;  %1133 = vtanh.f32 %v626_v11  ;;  %v520_v21 = vpop.f32.mrf.mxu0  ;;  %v642_v44 = vadd.f32 %v1032_v24, %v1397_v43 }
 0x1b3   :  { %708 = vadd.xlane.f32.xlu1 %v690_v10  ;;  %v688_v22 = vmul.f32 %v1116_v14, %v1412_v6  ;;  %1135 = vtanh.f32 %v508_v16  ;;  %v633_v31 = vpop.f32.mrf.mxu1  ;;  %v521_v52 = vadd.f32 %v1397_v43, %v520_v21 }
 0x1b4   :  { %v1118_v15 = vpop.eup %1117  ;;  %778 = vadd.xlane.f32.xlu0 %v760_v13  ;;  %1137 = vtanh.f32 %v505_v19  ;;  %v1001_v57 = vpop.f32.mrf.mxu0  ;;  %v634_v61 = vadd.f32 %v1397_v43, %v633_v31 }
 0x1b5   :  { %v691_v17 = vmul.f32 %v1118_v15, %v1412_v6  ;;  %v1120_v18 = vpop.eup %1119  ;;  %1139 = vtanh.f32 %v621_v25  ;;  %v532_v32 = vadd.f32 %v1001_v57, %v1397_v43  ;;  %v1033_v39 = vpop.f32.mrf.mxu1 }
 0x1b6   :  { %v1122_v23 = vpop.eup %1121  ;;  %v761_v26 = vmul.f32 %v1120_v18, %v1412_v6  ;;  %1141 = vtanh.f32 %v618_v28  ;;  %v523_v38 = vpop.f32.mrf.mxu0  ;;  %v645_v40 = vadd.f32 %v1033_v39, %v1397_v43 }
 0x1b7   :  { %710 = vadd.xlane.f32.xlu1 %v691_v17  ;;  %v1124_v27 = vpop.eup %1123  ;;  %v758_v29 = vmul.f32 %v1122_v23, %v1412_v6  ;;  %1143 = vtanh.f32 %v532_v32  ;;  %v636_v48 = vpop.f32.mrf.mxu1  ;;  %v524_v49 = vadd.f32 %v1397_v43, %v523_v38 }
 0x1b8   :  { %704 = vadd.xlane.f32.xlu0 %v688_v22  ;;  %v1126_v30 = vpop.eup %1125  ;;  %v759_v33 = vmul.f32 %v1124_v27, %v1412_v6  ;;  %1145 = vtanh.f32 %v529_v35  ;;  %v1004_v45 = vpop.f32.mrf.mxu0  ;;  %v637_v58 = vadd.f32 %v1397_v43, %v636_v48 }
 0x1b9   :  { %v689_v36 = vmul.f32 %v1126_v30, %v1412_v6  ;;  %1147 = vtanh.f32 %v645_v40  ;;  %v1036_v54 = vpop.f32.mrf.mxu1  ;;  %v545_v5 = vadd.f32 %v1004_v45, %v1397_v43 }
 0x1ba   :  { %1149 = vtanh.f32 %v642_v44  ;;  %v536_v53 = vpop.f32.mrf.mxu0  ;;  %v658_v27 = vadd.f32 %v1036_v54, %v1397_v43 }
 0x1bb   :  { %780 = vadd.xlane.f32.xlu1 %v761_v26  ;;  %1151 = vtanh.f32 %v524_v49  ;;  %v649_v63 = vpop.f32.mrf.mxu1  ;;  %v537_v14 = vadd.f32 %v1397_v43, %v536_v53 }
 0x1bc   :  { %774 = vadd.xlane.f32.xlu0 %v758_v29  ;;  %v1128_v34 = vpop.eup %1127  ;;  %1153 = vtanh.f32 %v521_v52  ;;  %v1005_v62 = vpop.f32.mrf.mxu0  ;;  %v650_v21 = vadd.f32 %v1397_v43, %v649_v63 }
 0x1bd   :  { %v1130_v37 = vpop.eup %1129  ;;  %v695_v41 = vmul.f32 %v1128_v34, %v1412_v6  ;;  %1155 = vtanh.f32 %v637_v58  ;;  %v548_v2 = vadd.f32 %v1005_v62, %v1397_v43  ;;  %v1037_v8 = vpop.f32.mrf.mxu1 }
 0x1be   :  { %v1132_v42 = vpop.eup %1131  ;;  %v694_v46 = vmul.f32 %v1130_v37, %v1412_v6  ;;  %1157 = vtanh.f32 %v634_v61  ;;  %v539_v7 = vpop.f32.mrf.mxu0  ;;  %v661_v24 = vadd.f32 %v1037_v8, %v1397_v43 }
 0x1bf   :  { %776 = vadd.xlane.f32.xlu1 %v759_v33  ;;  %v1134_v47 = vpop.eup %1133  ;;  %v765_v50 = vmul.f32 %v1132_v42, %v1412_v6  ;;  %1159 = vtanh.f32 %v548_v2  ;;  %v540_v11 = vadd.f32 %v1397_v43, %v539_v7  ;;  %v652_v15 = vpop.f32.mrf.mxu1 }
 0x1c0   :  { %706 = vadd.xlane.f32.xlu0 %v689_v36  ;;  %v1136_v51 = vpop.eup %1135  ;;  %v764_v55 = vmul.f32 %v1134_v47, %v1412_v6  ;;  %1161 = vtanh.f32 %v545_v5  ;;  %v653_v18 = vadd.f32 %v1397_v43, %v652_v15  ;;  %v1468_v47 = vld [vmem:[#allocation2] ss:$0 sm:$0xff] }
 0x1c1   :  { %v1138_v56 = vpop.eup %1137  ;;  %v693_v59 = vmul.f32 %v1136_v51, %v1412_v6  ;;  %1163 = vtanh.f32 %v540_v11 }
 0x1c2   :  { %v1140_v60 = vpop.eup %1139  ;;  %v692_v0 = vmul.f32 %v1138_v56, %v1412_v6  ;;  %1165 = vtanh.f32 %v537_v14 }
 0x1c3   :  { %718 = vadd.xlane.f32.xlu1 %v695_v41  ;;  %v1142_v1 = vpop.eup %1141  ;;  %v763_v3 = vmul.f32 %v1140_v60, %v1412_v6  ;;  %1167 = vtanh.f32 %v653_v18 }
 0x1c4   :  { %716 = vadd.xlane.f32.xlu0 %v694_v46  ;;  %v1144_v4 = vpop.eup %1143  ;;  %v762_v9 = vmul.f32 %v1142_v1, %v1412_v6  ;;  %1169 = vtanh.f32 %v650_v21 }
 0x1c5   :  { %v1146_v10 = vpop.eup %1145  ;;  %v699_v12 = vmul.f32 %v1144_v4, %v1412_v6  ;;  %1171 = vtanh.f32 %v661_v24 }
 0x1c6   :  { %v1148_v13 = vpop.eup %1147  ;;  %v698_v16 = vmul.f32 %v1146_v10, %v1412_v6  ;;  %1173 = vtanh.f32 %v658_v27 }
 0x1c7   :  { %788 = vadd.xlane.f32.xlu1 %v765_v50  ;;  %v1150_v17 = vpop.eup %1149  ;;  %v769_v19 = vmul.f32 %v1148_v13, %v1412_v6 }
 0x1c8   :  { %786 = vadd.xlane.f32.xlu0 %v764_v55  ;;  %v1152_v20 = vpop.eup %1151  ;;  %v768_v22 = vmul.f32 %v1150_v17, %v1412_v6 }
 0x1c9   :  { %v1154_v23 = vpop.eup %1153  ;;  %v697_v25 = vmul.f32 %v1152_v20, %v1412_v6 }
 0x1ca   :  { %v1156_v26 = vpop.eup %1155  ;;  %v696_v28 = vmul.f32 %v1154_v23, %v1412_v6 }
 0x1cb   :  { %714 = vadd.xlane.f32.xlu1 %v693_v59  ;;  %v1158_v57 = vpop.eup %1157  ;;  %v767_v29 = vmul.f32 %v1156_v26, %v1412_v6 }
 0x1cc   :  { %712 = vadd.xlane.f32.xlu0 %v692_v0  ;;  %v1160_v30 = vpop.eup %1159  ;;  %v766_v31 = vmul.f32 %v1158_v57, %v1412_v6 }
 0x1cd   :  { %v1162_v32 = vpop.eup %1161  ;;  %v703_v33 = vmul.f32 %v1160_v30, %v1412_v6 }
 0x1ce   :  { %v1164_v34 = vpop.eup %1163  ;;  %v702_v43 = vmul.f32 %v1162_v32, %v1412_v6 }
 0x1cf   :  { %784 = vadd.xlane.f32.xlu1 %v763_v3  ;;  %v1166_v35 = vpop.eup %1165  ;;  %v701_v36 = vmul.f32 %v1164_v34, %v1412_v6 }
 0x1d0   :  { %782 = vadd.xlane.f32.xlu0 %v762_v9  ;;  %v1168_v37 = vpop.eup %1167  ;;  %v700_v38 = vmul.f32 %v1166_v35, %v1412_v6 }
 0x1d1   :  { %v1170_v39 = vpop.eup %1169  ;;  %v771_v40 = vmul.f32 %v1168_v37, %v1412_v6 }
 0x1d2   :  { %v1172_v41 = vpop.eup %1171  ;;  %v770_v42 = vmul.f32 %v1170_v39, %v1412_v6 }
 0x1d3   :  { %726 = vadd.xlane.f32.xlu1 %v699_v12  ;;  %v1174_v44 = vpop.eup %1173  ;;  %v773_v45 = vmul.f32 %v1172_v41, %v1412_v6 }
 0x1d4   :  { %724 = vadd.xlane.f32.xlu0 %v698_v16  ;;  %v772_v46 = vmul.f32 %v1174_v44, %v1412_v6 }
 0x1d7   :  { %796 = vadd.xlane.f32.xlu1 %v769_v19 }
 0x1d8   :  { %794 = vadd.xlane.f32.xlu0 %v768_v22 }
 0x1db   :  { %722 = vadd.xlane.f32.xlu1 %v697_v25 }
 0x1dc   :  { %720 = vadd.xlane.f32.xlu0 %v696_v28 }
 0x1df   :  { %792 = vadd.xlane.f32.xlu1 %v767_v29 }
 0x1e0   :  { %790 = vadd.xlane.f32.xlu0 %v766_v31 }
 0x1e3   :  { %734 = vadd.xlane.f32.xlu1 %v703_v33 }
 0x1e4   :  { %732 = vadd.xlane.f32.xlu0 %v702_v43 }
 0x1e7   :  { %730 = vadd.xlane.f32.xlu1 %v701_v36 }
 0x1e8   :  { %728 = vadd.xlane.f32.xlu0 %v700_v38 }
 0x1eb   :  { %800 = vadd.xlane.f32.xlu1 %v771_v40 }
 0x1ec   :  { %798 = vadd.xlane.f32.xlu0 %v770_v42 }
 0x1ef   :  { %804 = vadd.xlane.f32.xlu1 %v773_v45 }
 0x1f0   :  { %802 = vadd.xlane.f32.xlu0 %v772_v46 }
 0x23c   :  { %v709_v48 = vpop.xlane.xlu1 %708 }
 0x23d   :  { %v779_v49 = vpop.xlane.xlu0 %778  ;;  %v744_v50 = vadd.f32 %v1468_v47, %v709_v48 }
 0x23e   :  { %v808_v51 = vadd.f32 %v1468_v47, %v779_v49 }
 0x23f   :  { %825 = vst.msk [vmem:[%s1637_s7 + $0x10] sm:$0xff] %vm822_vm1, %v744_v50 }
 0x240   :  { %841 = vst.msk [vmem:[%s1637_s7 + $0x90] sm:$0xff] %vm822_vm1, %v808_v51  ;;  %v711_v6 = vpop.xlane.xlu1 %710 }
 0x241   :  { %v745_v52 = vadd.f32 %v1468_v47, %v711_v6  ;;  %v705_v53 = vpop.xlane.xlu0 %704 }
 0x242   :  { %v742_v54 = vadd.f32 %v1468_v47, %v705_v53 }
 0x243   :  { %826 = vst.msk [vmem:[%s1637_s7 + $0x18] sm:$0xff] %vm822_vm1, %v745_v52 }
 0x244   :  { %823 = vst.msk [vmem:[%s1637_s7] sm:$0xff] %vm822_vm1, %v742_v54  ;;  %v781_v55 = vpop.xlane.xlu1 %780 }
 0x245   :  { %v809_v56 = vadd.f32 %v1468_v47, %v781_v55  ;;  %v775_v58 = vpop.xlane.xlu0 %774 }
 0x246   :  { %v806_v59 = vadd.f32 %v1468_v47, %v775_v58 }
 0x247   :  { %842 = vst.msk [vmem:[%s1637_s7 + $0x98] sm:$0xff] %vm822_vm1, %v809_v56 }
 0x248   :  { %839 = vst.msk [vmem:[%s1637_s7 + $0x80] sm:$0xff] %vm822_vm1, %v806_v59  ;;  %v777_v60 = vpop.xlane.xlu1 %776 }
 0x249   :  { %v807_v61 = vadd.f32 %v1468_v47, %v777_v60  ;;  %v707_v62 = vpop.xlane.xlu0 %706 }
 0x24a   :  { %v743_v63 = vadd.f32 %v1468_v47, %v707_v62 }
 0x24b   :  { %840 = vst.msk [vmem:[%s1637_s7 + $0x88] sm:$0xff] %vm822_vm1, %v807_v61 }
 0x24c   :  { %824 = vst.msk [vmem:[%s1637_s7 + $0x8] sm:$0xff] %vm822_vm1, %v743_v63  ;;  %v719_v0 = vpop.xlane.xlu1 %718 }
 0x24d   :  { %v749_v1 = vadd.f32 %v1468_v47, %v719_v0  ;;  %v717_v2 = vpop.xlane.xlu0 %716 }
 0x24e   :  { %v748_v3 = vadd.f32 %v1468_v47, %v717_v2 }
 0x24f   :  { %830 = vst.msk [vmem:[%s1637_s7 + $0x38] sm:$0xff] %vm822_vm1, %v749_v1 }
 0x250   :  { %829 = vst.msk [vmem:[%s1637_s7 + $0x30] sm:$0xff] %vm822_vm1, %v748_v3  ;;  %v789_v4 = vpop.xlane.xlu1 %788 }
 0x251   :  { %v813_v5 = vadd.f32 %v1468_v47, %v789_v4  ;;  %v787_v7 = vpop.xlane.xlu0 %786 }
 0x252   :  { %v812_v8 = vadd.f32 %v1468_v47, %v787_v7 }
 0x253   :  { %846 = vst.msk [vmem:[%s1637_s7 + $0xb8] sm:$0xff] %vm822_vm1, %v813_v5 }
 0x254   :  { %845 = vst.msk [vmem:[%s1637_s7 + $0xb0] sm:$0xff] %vm822_vm1, %v812_v8  ;;  %v715_v9 = vpop.xlane.xlu1 %714 }
 0x255   :  { %v747_v10 = vadd.f32 %v1468_v47, %v715_v9  ;;  %v713_v11 = vpop.xlane.xlu0 %712 }
 0x256   :  { %v746_v12 = vadd.f32 %v1468_v47, %v713_v11 }
 0x257   :  { %828 = vst.msk [vmem:[%s1637_s7 + $0x28] sm:$0xff] %vm822_vm1, %v747_v10 }
 0x258   :  { %827 = vst.msk [vmem:[%s1637_s7 + $0x20] sm:$0xff] %vm822_vm1, %v746_v12  ;;  %v785_v13 = vpop.xlane.xlu1 %784 }
 0x259   :  { %v811_v14 = vadd.f32 %v1468_v47, %v785_v13  ;;  %v783_v15 = vpop.xlane.xlu0 %782 }
 0x25a   :  { %v810_v16 = vadd.f32 %v1468_v47, %v783_v15 }
 0x25b   :  { %844 = vst.msk [vmem:[%s1637_s7 + $0xa8] sm:$0xff] %vm822_vm1, %v811_v14 }
 0x25c   :  { %843 = vst.msk [vmem:[%s1637_s7 + $0xa0] sm:$0xff] %vm822_vm1, %v810_v16  ;;  %v727_v17 = vpop.xlane.xlu1 %726 }
 0x25d   :  { %v753_v18 = vadd.f32 %v1468_v47, %v727_v17  ;;  %v725_v19 = vpop.xlane.xlu0 %724 }
 0x25e   :  { %v752_v20 = vadd.f32 %v1468_v47, %v725_v19 }
 0x25f   :  { %834 = vst.msk [vmem:[%s1637_s7 + $0x58] sm:$0xff] %vm822_vm1, %v753_v18 }
 0x260   :  { %833 = vst.msk [vmem:[%s1637_s7 + $0x50] sm:$0xff] %vm822_vm1, %v752_v20  ;;  %v797_v21 = vpop.xlane.xlu1 %796 }
 0x261   :  { %v817_v22 = vadd.f32 %v1468_v47, %v797_v21  ;;  %v795_v23 = vpop.xlane.xlu0 %794 }
 0x262   :  { %v816_v24 = vadd.f32 %v1468_v47, %v795_v23 }
 0x263   :  { %850 = vst.msk [vmem:[%s1637_s7 + $0xd8] sm:$0xff] %vm822_vm1, %v817_v22 }
 0x264   :  { %849 = vst.msk [vmem:[%s1637_s7 + $0xd0] sm:$0xff] %vm822_vm1, %v816_v24  ;;  %v723_v25 = vpop.xlane.xlu1 %722 }
 0x265   :  { %v751_v26 = vadd.f32 %v1468_v47, %v723_v25  ;;  %v721_v27 = vpop.xlane.xlu0 %720 }
 0x266   :  { %v750_v28 = vadd.f32 %v1468_v47, %v721_v27 }
 0x267   :  { %832 = vst.msk [vmem:[%s1637_s7 + $0x48] sm:$0xff] %vm822_vm1, %v751_v26 }
 0x268   :  { %831 = vst.msk [vmem:[%s1637_s7 + $0x40] sm:$0xff] %vm822_vm1, %v750_v28  ;;  %v793_v57 = vpop.xlane.xlu1 %792 }
 0x269   :  { %v815_v29 = vadd.f32 %v1468_v47, %v793_v57  ;;  %v791_v30 = vpop.xlane.xlu0 %790 }
 0x26a   :  { %v814_v31 = vadd.f32 %v1468_v47, %v791_v30 }
 0x26b   :  { %848 = vst.msk [vmem:[%s1637_s7 + $0xc8] sm:$0xff] %vm822_vm1, %v815_v29 }
 0x26c   :  { %847 = vst.msk [vmem:[%s1637_s7 + $0xc0] sm:$0xff] %vm822_vm1, %v814_v31  ;;  %v735_v32 = vpop.xlane.xlu1 %734 }
 0x26d   :  { %v757_v33 = vadd.f32 %v1468_v47, %v735_v32  ;;  %v733_v34 = vpop.xlane.xlu0 %732 }
 0x26e   :  { %v756_v43 = vadd.f32 %v1468_v47, %v733_v34 }
 0x26f   :  { %838 = vst.msk [vmem:[%s1637_s7 + $0x78] sm:$0xff] %vm822_vm1, %v757_v33 }
 0x270   :  { %837 = vst.msk [vmem:[%s1637_s7 + $0x70] sm:$0xff] %vm822_vm1, %v756_v43  ;;  %v731_v35 = vpop.xlane.xlu1 %730 }
 0x271   :  { %v755_v36 = vadd.f32 %v1468_v47, %v731_v35  ;;  %v729_v37 = vpop.xlane.xlu0 %728 }
 0x272   :  { %v754_v38 = vadd.f32 %v1468_v47, %v729_v37 }
 0x273   :  { %836 = vst.msk [vmem:[%s1637_s7 + $0x68] sm:$0xff] %vm822_vm1, %v755_v36 }
 0x274   :  { %835 = vst.msk [vmem:[%s1637_s7 + $0x60] sm:$0xff] %vm822_vm1, %v754_v38  ;;  %v801_v39 = vpop.xlane.xlu1 %800 }
 0x275   :  { %v819_v40 = vadd.f32 %v1468_v47, %v801_v39  ;;  %v799_v41 = vpop.xlane.xlu0 %798 }
 0x276   :  { %v818_v42 = vadd.f32 %v1468_v47, %v799_v41 }
 0x277   :  { %852 = vst.msk [vmem:[%s1637_s7 + $0xe8] sm:$0xff] %vm822_vm1, %v819_v40 }
 0x278   :  { %851 = vst.msk [vmem:[%s1637_s7 + $0xe0] sm:$0xff] %vm822_vm1, %v818_v42  ;;  %v805_v44 = vpop.xlane.xlu1 %804 }
 0x279   :  { %v821_v45 = vadd.f32 %v1468_v47, %v805_v44  ;;  %v803_v46 = vpop.xlane.xlu0 %802 }
 0x27a   :  { %v820_v48 = vadd.f32 %v1468_v47, %v803_v46 }
 0x27b   :  { %854 = vst.msk [vmem:[%s1637_s7 + $0xf8] sm:$0xff] %vm822_vm1, %v821_v45 }
 0x27c   :  { %853 = vst.msk [vmem:[%s1637_s7 + $0xf0] sm:$0xff] %vm822_vm1, %v820_v48 }

</bundles_post_ra>
